<compile_context>
chip_gen: v7x
topology: tpu7x:2x2x1
jax: 0.10.0
libtpu: 0.0.40
codegen_flags: <defaults>
</compile_context>

<pallas_src>
import jax
import jax.numpy as jnp
from jax.experimental import pallas as pl
from jax.experimental.pallas import tpu as pltpu

LANE = 128      # lane width: keep feature dims multiples of 128
SUBLANE = 8     # sublane granularity for the batch tile


def _round_up(n, m):
    return ((n + m - 1) // m) * m


def mlp_hidden_kernel(x_ref, w1_ref, b1_ref, w2_ref, b2_ref,
                      w3_ref, b3_ref, w4_ref, b4_ref, o_ref):
    """Fused 4-layer MLP on one (TB, Fp) batch tile.

    Matmuls: bf16 operands, f32 accumulation on the MXU. Intermediates never
    leave vregs/VMEM. Final H->L (L=1) projection runs on the VPU + XLU reduce.
    """
    f32 = jnp.float32
    x = x_ref[...]                                           # (TB, Fp) bf16

    # Layer 1: Linear + ReLU        (Dropout = identity, eval mode)
    h1 = jnp.dot(x, w1_ref[...], preferred_element_type=f32) + b1_ref[...]
    h1 = jnp.maximum(h1, 0.0).astype(x.dtype)

    # Layer 2: Linear + ReLU
    h2 = jnp.dot(h1, w2_ref[...], preferred_element_type=f32) + b2_ref[...]
    h2 = jnp.maximum(h2, 0.0).astype(x.dtype)

    # Layer 3: Linear + ReLU
    h3 = jnp.dot(h2, w3_ref[...], preferred_element_type=f32) + b3_ref[...]
    h3 = jnp.maximum(h3, 0.0)                                # stay f32 for epilogue

    # Layer 4: Linear + Sigmoid. For L==1 a 1-column matmul wastes the MXU; do a
    # VPU broadcast-multiply + lane reduce instead (slots otherwise idle here).
    w4 = w4_ref[...].astype(f32)                             # (L, H)
    b4 = b4_ref[...]                                         # (1, L) f32
    if w4.shape[0] == 1:
        logits = jnp.sum(h3 * w4, axis=-1, keepdims=True) + b4
    else:
        logits = jax.lax.dot_general(
            h3, w4, (((1,), (1,)), ((), ())),
            preferred_element_type=f32) + b4
    o_ref[...] = jax.nn.sigmoid(logits).astype(o_ref.dtype)


@jax.jit
def mlp_hidden_forward(x, prepared_params):
    """Batch-tiled pallas_call. Weights are VMEM-resident (constant index_map);
    only the x / out tiles stream across the batch grid."""
    w1, b1, w2, b2, w3, b3, w4, b4 = prepared_params
    B, F = x.shape
    Fp, Np = w1.shape
    H = w2.shape[1]
    L = w4.shape[0]

    # Batch tile: 128 rows (fills the MXU M dim); small batches round up to 8.
    TB = LANE if B >= LANE else _round_up(B, SUBLANE)
    B_pad = _round_up(B, TB)

    xp = jnp.pad(x.astype(jnp.bfloat16), ((0, B_pad - B), (0, Fp - F)))

    # Constant index_map -> block index never changes -> no re-DMA across steps.
    const = lambda shape: pl.BlockSpec(shape, lambda i: (0, 0))

    out = pl.pallas_call(
        mlp_hidden_kernel,
        out_shape=jax.ShapeDtypeStruct((B_pad, L), jnp.float32),
        grid=(B_pad // TB,),
        in_specs=[
            pl.BlockSpec((TB, Fp), lambda i: (i, 0)),        # x tile (streams)
            const((Fp, Np)), const((1, Np)),                 # W1, b1 (resident)
            const((Np, H)),  const((1, H)),                  # W2, b2
            const((H, H)),   const((1, H)),                  # W3, b3
            const((L, H)),   const((1, L)),                  # W4, b4
        ],
        out_specs=pl.BlockSpec((TB, L), lambda i: (i, 0)),
        compiler_params=pltpu.CompilerParams(
            dimension_semantics=("parallel",)),              # engages both TCs on v7x
    )(xp, w1, b1, w2, b2, w3, b3, w4, b4)
    return out[:B]


def init_params(key, no_features, no_neuron, no_hidden=128, no_labels=1):
    """PyTorch-layout params: W (out_features, in_features), b (out_features,),
    init U(-1/sqrt(fan_in), +1/sqrt(fan_in)) like nn.Linear."""
    def linear(k, fan_in, fan_out):
        kw, kb = jax.random.split(k)
        bound = 1.0 / jnp.sqrt(float(fan_in))
        w = jax.random.uniform(kw, (fan_out, fan_in), jnp.float32, -bound, bound)
        b = jax.random.uniform(kb, (fan_out,), jnp.float32, -bound, bound)
        return w, b

    k1, k2, k3, k4 = jax.random.split(key, 4)
    return (linear(k1, no_features, no_neuron)
            + linear(k2, no_neuron, no_hidden)
            + linear(k3, no_hidden, no_hidden)
            + linear(k4, no_hidden, no_labels))


def prepare_params(params):
    """Kernel-side layout: transpose hidden-layer weights to (in, out), zero-pad
    sub-128 feature dims to 128 (inert through ReLU), cast weights to bf16.
    Biases stay f32 (added after the f32 accumulation)."""
    w1, b1, w2, b2, w3, b3, w4, b4 = params
    N, F = w1.shape
    H = w2.shape[0]
    L = w4.shape[0]
    Fp, Np, Hp = _round_up(F, LANE), _round_up(N, LANE), _round_up(H, LANE)

    def pad2(a, rows, cols):
        return jnp.pad(a, ((0, rows - a.shape[0]), (0, cols - a.shape[1])))

    w1p = pad2(w1.T, Fp, Np).astype(jnp.bfloat16)            # (Fp, Np)
    b1p = jnp.pad(b1, (0, Np - N)).reshape(1, Np)            # f32
    w2p = pad2(w2.T, Np, Hp).astype(jnp.bfloat16)            # (Np, Hp)
    b2p = jnp.pad(b2, (0, Hp - H)).reshape(1, Hp)
    w3p = pad2(w3.T, Hp, Hp).astype(jnp.bfloat16)            # (Hp, Hp)
    b3p = jnp.pad(b3, (0, Hp - H)).reshape(1, Hp)
    w4p = pad2(w4, L, Hp).astype(jnp.float32)                # (L, Hp), f32 (VPU path)
    b4p = b4.reshape(1, L).astype(jnp.float32)
    return (w1p, b1p, w2p, b2p, w3p, b3p, w4p, b4p)


if __name__ == "__main__":
    # Shapes consistent with the module's forward:
    #   no_features=32, no_neuron=64, no_hidden=128, no_labels=1.
    # Batch 200 -> tile 128, padded to 256, grid=(2,): exercises tiling + padding.
    B, F, N, H, L = 200, 32, 64, 128, 1

    key = jax.random.PRNGKey(0)
    kx, kp = jax.random.split(key)
    x = jax.random.normal(kx, (B, F), jnp.float32)
    params = init_params(kp, F, N, H, L)
    prepared = prepare_params(params)

    out = jax.block_until_ready(mlp_hidden_forward(x, prepared))

    # Pure-JAX f32 reference (eval-mode dropout = identity).
    w1, b1, w2, b2, w3, b3, w4, b4 = params
    h = jnp.maximum(x @ w1.T + b1, 0.0)
    h = jnp.maximum(h @ w2.T + b2, 0.0)
    h = jnp.maximum(h @ w3.T + b3, 0.0)
    ref = jax.nn.sigmoid(h @ w4.T + b4)

    assert out.shape == (B, L)
    # bf16 operands => relax tolerance vs. the pure-f32 reference.
    assert jnp.allclose(out, ref, atol=2e-2, rtol=2e-2), \
        float(jnp.max(jnp.abs(out - ref)))

    print("KERNEL_OK")
</pallas_src>

<mosaic_0001>
module attributes {stable_mosaic.version = 11 : i64} {
  func.func @mlp_hidden_kernel(%arg0: i32, %arg1: memref<128x128xbf16, #tpu.memory_space<vmem>>, %arg2: memref<128x128xbf16, #tpu.memory_space<vmem>>, %arg3: memref<1x128xf32, #tpu.memory_space<vmem>>, %arg4: memref<128x128xbf16, #tpu.memory_space<vmem>>, %arg5: memref<1x128xf32, #tpu.memory_space<vmem>>, %arg6: memref<128x128xbf16, #tpu.memory_space<vmem>>, %arg7: memref<1x128xf32, #tpu.memory_space<vmem>>, %arg8: memref<1x128xf32, #tpu.memory_space<vmem>>, %arg9: memref<1x1xf32, #tpu.memory_space<vmem>>, %arg10: memref<128x1xf32, #tpu.memory_space<vmem>>) attributes {dimension_semantics = [#tpu.dimension_semantics<parallel>], iteration_bounds = array<i64: 2>, scalar_prefetch = 0 : i64, scratch_operands = 0 : i64, tpu.core_type = #tpu.core_type<tc>, window_params = [{transform_indices = @transform_0, window_bounds = array<i64: 128, 128>}, {pipeline_mode = #tpu.pipeline_mode<synchronous>, transform_indices = @transform_1, window_bounds = array<i64: 128, 128>}, {pipeline_mode = #tpu.pipeline_mode<synchronous>, transform_indices = @transform_2, window_bounds = array<i64: 1, 128>}, {pipeline_mode = #tpu.pipeline_mode<synchronous>, transform_indices = @transform_3, window_bounds = array<i64: 128, 128>}, {pipeline_mode = #tpu.pipeline_mode<synchronous>, transform_indices = @transform_4, window_bounds = array<i64: 1, 128>}, {pipeline_mode = #tpu.pipeline_mode<synchronous>, transform_indices = @transform_5, window_bounds = array<i64: 128, 128>}, {pipeline_mode = #tpu.pipeline_mode<synchronous>, transform_indices = @transform_6, window_bounds = array<i64: 1, 128>}, {pipeline_mode = #tpu.pipeline_mode<synchronous>, transform_indices = @transform_7, window_bounds = array<i64: 1, 128>}, {pipeline_mode = #tpu.pipeline_mode<synchronous>, transform_indices = @transform_8, window_bounds = array<i64: 1, 1>}, {transform_indices = @transform_9, window_bounds = array<i64: 128, 1>}]} {
    %c0 = arith.constant 0 : index
    %c0_0 = arith.constant 0 : index
    %0 = vector.load %arg1[%c0, %c0_0] : memref<128x128xbf16, #tpu.memory_space<vmem>>, vector<128x128xbf16>
    %c0_1 = arith.constant 0 : index
    %c0_2 = arith.constant 0 : index
    %1 = vector.load %arg2[%c0_1, %c0_2] : memref<128x128xbf16, #tpu.memory_space<vmem>>, vector<128x128xbf16>
    %cst = arith.constant dense<0.000000e+00> : vector<128x128xf32>
    %2 = tpu.matmul %0, %1, %cst {dimension_numbers = #tpu.dot_dimension_numbers<[1], [0], [0], [1], [0, 0, 1, 1], [], []>} : vector<128x128xbf16>, vector<128x128xbf16>, vector<128x128xf32> -> vector<128x128xf32>
    %c0_3 = arith.constant 0 : index
    %c0_4 = arith.constant 0 : index
    %3 = vector.load %arg3[%c0_3, %c0_4] : memref<1x128xf32, #tpu.memory_space<vmem>>, vector<1x128xf32>
    %4 = vector.broadcast %3 : vector<1x128xf32> to vector<128x128xf32>
    %5 = arith.addf %2, %4 : vector<128x128xf32>
    %cst_5 = arith.constant 0.000000e+00 : f32
    %6 = vector.broadcast %cst_5 : f32 to vector<128x128xf32>
    %7 = arith.maximumf %5, %6 : vector<128x128xf32>
    %8 = arith.truncf %7 : vector<128x128xf32> to vector<128x128xbf16>
    %c0_6 = arith.constant 0 : index
    %c0_7 = arith.constant 0 : index
    %9 = vector.load %arg4[%c0_6, %c0_7] : memref<128x128xbf16, #tpu.memory_space<vmem>>, vector<128x128xbf16>
    %cst_8 = arith.constant dense<0.000000e+00> : vector<128x128xf32>
    %10 = tpu.matmul %8, %9, %cst_8 {dimension_numbers = #tpu.dot_dimension_numbers<[1], [0], [0], [1], [0, 0, 1, 1], [], []>} : vector<128x128xbf16>, vector<128x128xbf16>, vector<128x128xf32> -> vector<128x128xf32>
    %c0_9 = arith.constant 0 : index
    %c0_10 = arith.constant 0 : index
    %11 = vector.load %arg5[%c0_9, %c0_10] : memref<1x128xf32, #tpu.memory_space<vmem>>, vector<1x128xf32>
    %12 = vector.broadcast %11 : vector<1x128xf32> to vector<128x128xf32>
    %13 = arith.addf %10, %12 : vector<128x128xf32>
    %cst_11 = arith.constant 0.000000e+00 : f32
    %14 = vector.broadcast %cst_11 : f32 to vector<128x128xf32>
    %15 = arith.maximumf %13, %14 : vector<128x128xf32>
    %16 = arith.truncf %15 : vector<128x128xf32> to vector<128x128xbf16>
    %c0_12 = arith.constant 0 : index
    %c0_13 = arith.constant 0 : index
    %17 = vector.load %arg6[%c0_12, %c0_13] : memref<128x128xbf16, #tpu.memory_space<vmem>>, vector<128x128xbf16>
    %cst_14 = arith.constant dense<0.000000e+00> : vector<128x128xf32>
    %18 = tpu.matmul %16, %17, %cst_14 {dimension_numbers = #tpu.dot_dimension_numbers<[1], [0], [0], [1], [0, 0, 1, 1], [], []>} : vector<128x128xbf16>, vector<128x128xbf16>, vector<128x128xf32> -> vector<128x128xf32>
    %c0_15 = arith.constant 0 : index
    %c0_16 = arith.constant 0 : index
    %19 = vector.load %arg7[%c0_15, %c0_16] : memref<1x128xf32, #tpu.memory_space<vmem>>, vector<1x128xf32>
    %20 = vector.broadcast %19 : vector<1x128xf32> to vector<128x128xf32>
    %21 = arith.addf %18, %20 : vector<128x128xf32>
    %cst_17 = arith.constant 0.000000e+00 : f32
    %22 = vector.broadcast %cst_17 : f32 to vector<128x128xf32>
    %23 = arith.maximumf %21, %22 : vector<128x128xf32>
    %c0_18 = arith.constant 0 : index
    %c0_19 = arith.constant 0 : index
    %24 = vector.load %arg8[%c0_18, %c0_19] : memref<1x128xf32, #tpu.memory_space<vmem>>, vector<1x128xf32>
    %c0_20 = arith.constant 0 : index
    %c0_21 = arith.constant 0 : index
    %25 = vector.load %arg9[%c0_20, %c0_21] : memref<1x1xf32, #tpu.memory_space<vmem>>, vector<1x1xf32>
    %26 = vector.broadcast %24 : vector<1x128xf32> to vector<128x128xf32>
    %27 = arith.mulf %23, %26 : vector<128x128xf32>
    %cst_22 = arith.constant dense<0.000000e+00> : vector<128xf32>
    %28 = vector.multi_reduction <add>, %27, %cst_22 [1] : vector<128x128xf32> to vector<128xf32>
    %29 = vector.shape_cast %28 : vector<128xf32> to vector<128x1xf32>
    %30 = vector.broadcast %25 : vector<1x1xf32> to vector<128x1xf32>
    %31 = arith.addf %29, %30 : vector<128x1xf32>
    %32 = arith.negf %31 : vector<128x1xf32>
    %33 = math.exp %32 : vector<128x1xf32>
    %cst_23 = arith.constant 1.000000e+00 : f32
    %34 = vector.broadcast %cst_23 : f32 to vector<128x1xf32>
    %35 = arith.addf %34, %33 : vector<128x1xf32>
    %36 = arith.divf %34, %35 : vector<128x1xf32>
    %c0_24 = arith.constant 0 : index
    %c0_25 = arith.constant 0 : index
    %37 = vector.load %arg10[%c0_24, %c0_25] : memref<128x1xf32, #tpu.memory_space<vmem>>, vector<128x1xf32>
    tpu.vector_store %arg10[%c0_24, %c0_25], %36 {strides = array<i32>} : memref<128x1xf32, #tpu.memory_space<vmem>>, vector<128x1xf32>,
    return
  }
  func.func @transform_0(%arg0: i32) -> (i32, i32) {
    %c0_i32 = arith.constant 0 : i32
    %c0_i32_0 = arith.constant 0 : i32
    return %arg0, %c0_i32 : i32, i32
  }
  func.func @transform_1(%arg0: i32) -> (i32, i32) {
    %c0_i32 = arith.constant 0 : i32
    %c0_i32_0 = arith.constant 0 : i32
    %c0_i32_1 = arith.constant 0 : i32
    return %c0_i32, %c0_i32_0 : i32, i32
  }
  func.func @transform_2(%arg0: i32) -> (i32, i32) {
    %c0_i32 = arith.constant 0 : i32
    %c0_i32_0 = arith.constant 0 : i32
    %c0_i32_1 = arith.constant 0 : i32
    return %c0_i32, %c0_i32_0 : i32, i32
  }
  func.func @transform_3(%arg0: i32) -> (i32, i32) {
    %c0_i32 = arith.constant 0 : i32
    %c0_i32_0 = arith.constant 0 : i32
    %c0_i32_1 = arith.constant 0 : i32
    return %c0_i32, %c0_i32_0 : i32, i32
  }
  func.func @transform_4(%arg0: i32) -> (i32, i32) {
    %c0_i32 = arith.constant 0 : i32
    %c0_i32_0 = arith.constant 0 : i32
    %c0_i32_1 = arith.constant 0 : i32
    return %c0_i32, %c0_i32_0 : i32, i32
  }
  func.func @transform_5(%arg0: i32) -> (i32, i32) {
    %c0_i32 = arith.constant 0 : i32
    %c0_i32_0 = arith.constant 0 : i32
    %c0_i32_1 = arith.constant 0 : i32
    return %c0_i32, %c0_i32_0 : i32, i32
  }
  func.func @transform_6(%arg0: i32) -> (i32, i32) {
    %c0_i32 = arith.constant 0 : i32
    %c0_i32_0 = arith.constant 0 : i32
    %c0_i32_1 = arith.constant 0 : i32
    return %c0_i32, %c0_i32_0 : i32, i32
  }
  func.func @transform_7(%arg0: i32) -> (i32, i32) {
    %c0_i32 = arith.constant 0 : i32
    %c0_i32_0 = arith.constant 0 : i32
    %c0_i32_1 = arith.constant 0 : i32
    return %c0_i32, %c0_i32_0 : i32, i32
  }
  func.func @transform_8(%arg0: i32) -> (i32, i32) {
    %c0_i32 = arith.constant 0 : i32
    %c0_i32_0 = arith.constant 0 : i32
    %c0_i32_1 = arith.constant 0 : i32
    return %c0_i32, %c0_i32_0 : i32, i32
  }
  func.func @transform_9(%arg0: i32) -> (i32, i32) {
    %c0_i32 = arith.constant 0 : i32
    %c0_i32_0 = arith.constant 0 : i32
    return %arg0, %c0_i32 : i32, i32
  }
}

</mosaic_0001>

<bundles_post_ra>
// kernel: mlp_hidden_forward.1
= control target key start
LH: loop header
LB: loop body
LE: loop exit
PB: predicated region body
PF: predicated region fallthrough
CT: control target
= control target key end

     0   :  { %s1607_s11 = smov 0   ;;  %s1846_s0 = inlined_call_operand.vmem [shape: bf16[256,128], index: 0, kind: input, shape index: {}]   ;;  %s1847_s1 = inlined_call_operand.vmem [shape: bf16[128,128], index: 1, kind: input, shape index: {}]   ;;  %s1848_s2 = inlined_call_operand.vmem [shape: f32[1,128], index: 2, kind: input, shape index: {}]   ;;  %s1849_s3 = inlined_call_operand.vmem [shape: bf16[128,128], index: 3, kind: input, shape index: {}]   ;;  %s1850_s4 = inlined_call_operand.vmem [shape: f32[1,128], index: 4, kind: input, shape index: {}]   ;;  %s1851_s5 = inlined_call_operand.vmem [shape: bf16[128,128], index: 5, kind: input, shape index: {}]   ;;  %s1852_s6 = inlined_call_operand.vmem [shape: f32[1,128], index: 6, kind: input, shape index: {}]   ;;  %s1853_s7 = inlined_call_operand.vmem [shape: f32[1,128], index: 7, kind: input, shape index: {}]   ;;  %s1854_s8 = inlined_call_operand.<no memory space> [shape: f32[1,1], index: 8, kind: input, shape index: {}]   ;;  %s1855_s9 = inlined_call_operand.vmem [shape: f32[256,1], index: 9, kind: output, shape index: {}]  }
   0x1   :  { %v14_v0 = vstv %s1854_s8 }
   0x2   :  { %15 = vst [vmem:[#allocation2] sm:$0x1] %v14_v0 }
   0x3 LB: > { %s1218_s12 = sadd.s32 4294967295, %s1552_s11   ;;  %p1222_p0 = scmp.ge.s32.totalorder %s1552_s11, 1  ;;  %s1552_s11 = sphi %s1607_s11, %s21_s11  }
   0x4   : > { %p290_p1 = scmp.lt.s32.totalorder %s1552_s11, 3 }
   0x6   : > { %p291_p2 = pnand %p1222_p0, %p290_p1 }
   0x7   : > { %v1450_v1 = vld [vmem:[%s1847_s1] sm:$0xff] (!%p291_p2)   ;;  %s1223_s8 = sshll.u32 (!%p291_p2), %s1218_s12, 4  ;;  %v1451_v2 = vld [vmem:[%s1847_s1 + $0x8] sm:$0xff] (!%p291_p2)   ;;  %v1452_v3 = vld [vmem:[%s1847_s1 + $0x10] sm:$0xff] (!%p291_p2)   ;;  %vm1145_vm0 = vcmask (!%p291_p2), 7168  }
   0x8   : > { %294 = sbr.rel (%p291_p2) target bundleno = 904 (0x388), region = 56  ;;  %p327_p3 = scmp.lt.s32.totalorder (!%p291_p2), %s1223_s8, 31  ;;  %1330 = vmatprep.subr.bf16.mxu0 (!%p291_p2), %v1450_v1  ;;  %v1453_v4 = vld [vmem:[%s1847_s1 + $0x18] sm:$0xff] (!%p291_p2)   ;;  %v1454_v6 = vld [vmem:[%s1847_s1 + $0x20] sm:$0xff] (!%p291_p2)   ;;  %v1455_v7 = vld [vmem:[%s1847_s1 + $0x28] sm:$0xff] (!%p291_p2)  }
   0x9   : > { %1331 = vmatpush3.bf16.msra.mxu0 (!%p291_p2), %v1450_v1  ;;  %v1466_v8 = vld [vmem:[%s1849_s3] sm:$0xff] (!%p291_p2)   ;;  %v1467_v9 = vld [vmem:[%s1849_s3 + $0x8] sm:$0xff] (!%p291_p2)   ;;  %v1456_v10 = vld [vmem:[%s1847_s1 + $0x30] sm:$0xff] (!%p291_p2)  }
   0xa   : > { %1332 = vmatprep.subr.bf16.mxu0 (!%p291_p2), %v1451_v2  ;;  %1362 = vmatprep.subr.bf16.mxu1 (!%p291_p2), %v1466_v8  ;;  %v1468_v11 = vld [vmem:[%s1849_s3 + $0x10] sm:$0xff] (!%p291_p2)   ;;  %v1457_v12 = vld [vmem:[%s1847_s1 + $0x38] sm:$0xff] (!%p291_p2)   ;;  %v1470_v14 = vld [vmem:[%s1849_s3 + $0x20] sm:$0xff] (!%p291_p2)  }
   0xb   : > { %1363 = vmatpush3.bf16.msra.mxu1 (!%p291_p2), %v1466_v8  ;;  %v1469_v13 = vld [vmem:[%s1849_s3 + $0x18] sm:$0xff] (!%p291_p2)   ;;  %v1471_v17 = vld [vmem:[%s1849_s3 + $0x28] sm:$0xff] (!%p291_p2)   ;;  %v1472_v23 = vld [vmem:[%s1849_s3 + $0x30] sm:$0xff] (!%p291_p2)  }
   0xc   : > { %1364 = vmatprep.subr.bf16.mxu1 (!%p291_p2), %v1467_v9  ;;  %v1473_v24 = vld [vmem:[%s1849_s3 + $0x38] sm:$0xff] (!%p291_p2)   ;;  %v1474_v25 = vld [vmem:[%s1851_s5] sm:$0xff] (!%p291_p2)   ;;  %v1475_v26 = vld [vmem:[%s1851_s5 + $0x8] sm:$0xff] (!%p291_p2)  }
   0xd   : > { %1333 = vmatpush3.bf16.msra.mxu0 (!%p291_p2), %v1451_v2  ;;  %v1476_v27 = vld [vmem:[%s1851_s5 + $0x10] sm:$0xff] (!%p291_p2)   ;;  %v1691_v28 = vld [vmem:[%s1851_s5 + $0x18] sm:$0xff] (!%p291_p2)   ;;  %v1697_v29 = vld [vmem:[%s1851_s5 + $0x20] sm:$0xff] (!%p291_p2)  }
   0xe   : > { %1334 = vmatprep.subr.bf16.mxu0 (!%p291_p2), %v1452_v3  ;;  %v1704_v30 = vld [vmem:[%s1851_s5 + $0x28] sm:$0xff] (!%p291_p2)   ;;  %v1712_v31 = vld [vmem:[%s1848_s2] ss:$0 sm:$0xff] (!%p291_p2) }
   0xf   : > { %s1857_s8 = smov (!%p327_p3, %s1223_s8), 31  ;;  %1365 = vmatpush3.bf16.msra.mxu1 %v1467_v9 }
  0x10   : > { %s1224_s19 = sshll.u32 %s1857_s8, 2  ;;  %1366 = vmatprep.subr.bf16.mxu1 %v1468_v11 }
  0x11   : > { %s1630_s22 = scalar_lea.vmem %s1846_s0, %s1224_s19  ;;  %1335 = vmatpush3.bf16.msra.mxu0 %v1452_v3 }
  0x12   : > { %v1458_v5 = vld [vmem:[%s1630_s22] sm:$0xff]   ;;  %1336 = vmatprep.subr.bf16.mxu0 %v1453_v4  ;;  %v1459_v15 = vld [vmem:[%s1630_s22 + $0x8] sm:$0xff]   ;;  %v1460_v16 = vld [vmem:[%s1630_s22 + $0x10] sm:$0xff]  }
  0x13   : > { %1346 = vmatprep.mubr.bf16.mxu0 %v1458_v5  ;;  %1367 = vmatpush3.bf16.msra.mxu1 %v1468_v11  ;;  %v1461_v18 = vld [vmem:[%s1630_s22 + $0x18] sm:$0xff]   ;;  %v1462_v19 = vld [vmem:[%s1630_s22 + $0x20] sm:$0xff]   ;;  %v1463_v20 = vld [vmem:[%s1630_s22 + $0x28] sm:$0xff]  }
  0x14   : > { %1368 = vmatprep.subr.bf16.mxu1 %v1469_v13  ;;  %v1464_v21 = vld [vmem:[%s1630_s22 + $0x30] sm:$0xff]   ;;  %v1465_v22 = vld [vmem:[%s1630_s22 + $0x38] sm:$0xff]   ;;  %s1226_s22 = sshll.u32 %s1857_s8, 3 }
  0x15   : > { %1337 = vmatpush3.bf16.msra.mxu0 %v1453_v4  ;;  %s1805_s16 = scalar_lea.vmem %s1855_s9, %s1226_s22 }
  0x16   : > { %1338 = vmatprep.subr.bf16.mxu0 %v1454_v6 }
  0x17   : > { %1369 = vmatpush3.bf16.msra.mxu1 %v1469_v13 }
  0x18   : > { %1370 = vmatprep.subr.bf16.mxu1 %v1470_v14 }
  0x19   : > { %1339 = vmatpush3.bf16.msra.mxu0 %v1454_v6 }
  0x1a   : > { %1340 = vmatprep.subr.bf16.mxu0 %v1455_v7 }
  0x1b   : > { %1371 = vmatpush3.bf16.msra.mxu1 %v1470_v14 }
  0x1c   : > { %1372 = vmatprep.subr.bf16.mxu1 %v1471_v17 }
  0x1d   : > { %1341 = vmatpush3.bf16.msra.mxu0 %v1455_v7 }
  0x1e   : > { %1342 = vmatprep.subr.bf16.mxu0 %v1456_v10 }
  0x1f   : > { %1373 = vmatpush3.bf16.msra.mxu1 %v1471_v17 }
  0x20   : > { %1374 = vmatprep.subr.bf16.mxu1 %v1472_v23 }
  0x21   : > { %1343 = vmatpush3.bf16.msra.mxu0 %v1456_v10 }
  0x22   : > { %1344 = vmatprep.subr.bf16.mxu0 %v1457_v12 }
  0x23   : > { %1375 = vmatpush3.bf16.msra.mxu1 %v1472_v23 }
  0x24   : > { %1376 = vmatprep.subr.bf16.mxu1 %v1473_v24 }
  0x25   : > { %1345 = vmatpush3.bf16.msra.mxu0 %v1457_v12 }
  0x26   : > { %1394 = vmatprep.subr.bf16.mxu0 %v1474_v25 }
  0x27   : > { %1377 = vmatpush3.bf16.msra.mxu1 %v1473_v24  ;;  %v1480_v24 = vld [vmem:[%s1851_s5 + $0x30] sm:$0xff]  }
  0x28   : > { %1347 = vmatmul.mubr.bf16.vlgmr.msra.gmra.mrb[0].mxu0 %v1459_v15  ;;  %1426 = vmatprep.subr.bf16.mxu1 %v1474_v25 }
  0x29   : > { %1350 = vmatprep.mubr.bf16.mxu0 %v1460_v16  ;;  %1395 = vmatpush3.bf16.msra.mxu0 %v1474_v25 }
  0x2a   : > { %1396 = vmatprep.subr.bf16.mxu0 %v1475_v26 }
  0x2d   : > { %1397 = vmatpush3.bf16.msra.mxu0 %v1475_v26 }
  0x2e   : > { %1398 = vmatprep.subr.bf16.mxu0 %v1476_v27 }
  0x30   : > { %1351 = vmatmul.mubr.bf16.gmra.mrb[4].mxu0 %v1461_v18 }
  0x31   : > { %1354 = vmatprep.mubr.bf16.mxu0 %v1462_v19  ;;  %1399 = vmatpush3.bf16.msra.mxu0 %v1476_v27 }
  0x32   : > { %1400 = vmatprep.subr.bf16.mxu0 %v1691_v28 }
  0x35   : > { %1401 = vmatpush3.bf16.msra.mxu0 %v1691_v28 }
  0x36   : > { %1402 = vmatprep.subr.bf16.mxu0 %v1697_v29 }
  0x38   : > { %1355 = vmatmul.mubr.bf16.gmra.mrb[8].mxu0 %v1463_v20 }
  0x39   : > { %1358 = vmatprep.mubr.bf16.mxu0 %v1464_v21  ;;  %1403 = vmatpush3.bf16.msra.mxu0 %v1697_v29 }
  0x3a   : > { %1404 = vmatprep.subr.bf16.mxu0 %v1704_v30 }
  0x3d   : > { %1405 = vmatpush3.bf16.msra.mxu0 %v1704_v30 }
  0x3e   : > { %1406 = vmatprep.subr.bf16.mxu0 %v1480_v24 }
  0x40   : > { %1359 = vmatmul.mubr.bf16.gmra.mrb[12].mxu0 %v1465_v22 }
  0x41   : > { %1407 = vmatpush3.bf16.msra.mxu0 %v1480_v24 }
  0xfb   : > { %v1348_v32 = vpop.f32.mrb[0].mxu0 }
  0xfc   : > { %v517_v33 = vadd.f32 %v1348_v32, %v1712_v31  ;;  %v508_v34 = vpop.f32.mrb[1].mxu0 }
  0xfd   : > { %v509_v35 = vadd.f32 %v1712_v31, %v508_v34  ;;  %v1349_v36 = vpop.f32.mrb[2].mxu0 }
  0xfe   : > { %v520_v37 = vadd.f32 %v1349_v36, %v1712_v31  ;;  %v511_v38 = vpop.f32.mrb[3].mxu0  ;;  %v573_v40 = vmax.f32 %v517_v33, 0.0 }
  0xff   : > { %v512_v39 = vadd.f32 %v1712_v31, %v511_v38  ;;  %v571_v42 = vmax.f32 %v509_v35, 0.0 }
 0x100   : > { %v574_v41 = vmax.f32 %v520_v37, 0.0 }
 0x101   : > { %v572_v43 = vmax.f32 %v512_v39, 0.0 }
 0x102   : > { %v588_v44 = vpack.c.bf16 %v574_v41, %v573_v40 }
 0x103   : > { %v1352_v45 = vpop.f32.mrb[4].mxu0  ;;  %v587_v46 = vpack.c.bf16 %v572_v43, %v571_v42 }
 0x104   : > { %v533_v47 = vadd.f32 %v1352_v45, %v1712_v31  ;;  %v524_v48 = vpop.f32.mrb[5].mxu0 }
 0x105   : > { %v525_v49 = vadd.f32 %v1712_v31, %v524_v48  ;;  %v1353_v50 = vpop.f32.mrb[6].mxu0  ;;  %1378 = vmatprep.mubr.bf16.mxu1 %v587_v46 }
 0x106   : > { %v536_v51 = vadd.f32 %v1353_v50, %v1712_v31  ;;  %v527_v52 = vpop.f32.mrb[7].mxu0  ;;  %1379 = vmatmul.mubr.bf16.vlgmr.msra.gmra.mrb[0].mxu1 %v588_v44  ;;  %v577_v54 = vmax.f32 %v533_v47, 0.0 }
 0x107   : > { %v528_v53 = vadd.f32 %v1712_v31, %v527_v52  ;;  %1434 = vmatpush3.bf16.msra.mxu1 %v1474_v25  ;;  %v575_v56 = vmax.f32 %v525_v49, 0.0  ;;  %v1481_v25 = vld [vmem:[%s1851_s5 + $0x38] sm:$0xff]  }
 0x108   : > { %v578_v55 = vmax.f32 %v536_v51, 0.0  ;;  %1427 = vmatprep.subr.bf16.mxu1 %v1475_v26  ;;  %1408 = vmatprep.subr.bf16.mxu0 %v1481_v25 }
 0x109   : > { %v576_v57 = vmax.f32 %v528_v53, 0.0  ;;  %1409 = vmatpush3.bf16.msra.mxu0 %v1481_v25 }
 0x10a   : > { %v590_v58 = vpack.c.bf16 %v578_v55, %v577_v54 }
 0x10b   : > { %v589_v59 = vpack.c.bf16 %v576_v57, %v575_v56  ;;  %v1356_v60 = vpop.f32.mrb[8].mxu0  ;;  %1435 = vmatpush3.bf16.msra.mxu1 %v1475_v26  ;;  %v1244_v26 = vld [vmem:[%s1850_s4] ss:$0 sm:$0xff] }
 0x10c   : > { %v549_v61 = vadd.f32 %v1356_v60, %v1712_v31  ;;  %v540_v62 = vpop.f32.mrb[9].mxu0  ;;  %1428 = vmatprep.subr.bf16.mxu1 %v1476_v27 }
 0x10d   : > { %v541_v63 = vadd.f32 %v1712_v31, %v540_v62  ;;  %v1357_v0 = vpop.f32.mrb[10].mxu0  ;;  %1382 = vmatprep.mubr.bf16.mxu1 %v589_v59 }
 0x10e   : > { %v552_v1 = vadd.f32 %v1357_v0, %v1712_v31  ;;  %v543_v2 = vpop.f32.mrb[11].mxu0  ;;  %1383 = vmatmul.mubr.bf16.gmra.mrb[4].mxu1 %v590_v58  ;;  %v581_v4 = vmax.f32 %v549_v61, 0.0 }
 0x10f   : > { %v544_v3 = vadd.f32 %v1712_v31, %v543_v2  ;;  %1436 = vmatpush3.bf16.msra.mxu1 %v1476_v27  ;;  %v579_v6 = vmax.f32 %v541_v63, 0.0 }
 0x110   : > { %v582_v5 = vmax.f32 %v552_v1, 0.0  ;;  %1429 = vmatprep.subr.bf16.mxu1 %v1691_v28 }
 0x111   : > { %v580_v7 = vmax.f32 %v544_v3, 0.0 }
 0x112   : > { %v592_v8 = vpack.c.bf16 %v582_v5, %v581_v4 }
 0x113   : > { %v591_v9 = vpack.c.bf16 %v580_v7, %v579_v6  ;;  %v1360_v10 = vpop.f32.mrb[12].mxu0  ;;  %1437 = vmatpush3.bf16.msra.mxu1 %v1691_v28 }
 0x114   : > { %v565_v11 = vadd.f32 %v1360_v10, %v1712_v31  ;;  %v556_v12 = vpop.f32.mrb[13].mxu0  ;;  %1430 = vmatprep.subr.bf16.mxu1 %v1697_v29 }
 0x115   : > { %v557_v13 = vadd.f32 %v1712_v31, %v556_v12  ;;  %v1361_v14 = vpop.f32.mrb[14].mxu0  ;;  %1386 = vmatprep.mubr.bf16.mxu1 %v591_v9 }
 0x116   : > { %v568_v15 = vadd.f32 %v1361_v14, %v1712_v31  ;;  %v559_v16 = vpop.f32.mrb[15].mxu0  ;;  %1387 = vmatmul.mubr.bf16.gmra.mrb[8].mxu1 %v592_v8  ;;  %v585_v18 = vmax.f32 %v565_v11, 0.0 }
 0x117   : > { %v560_v17 = vadd.f32 %v1712_v31, %v559_v16  ;;  %1438 = vmatpush3.bf16.msra.mxu1 %v1697_v29  ;;  %v583_v20 = vmax.f32 %v557_v13, 0.0 }
 0x118   : > { %v586_v19 = vmax.f32 %v568_v15, 0.0  ;;  %1431 = vmatprep.subr.bf16.mxu1 %v1704_v30 }
 0x119   : > { %v584_v21 = vmax.f32 %v560_v17, 0.0 }
 0x11a   : > { %v594_v22 = vpack.c.bf16 %v586_v19, %v585_v18  ;;  %v1748_v19 = vld [vmem:[%s1852_s6] ss:$0 sm:$0xff] }
 0x11b   : > { %v593_v23 = vpack.c.bf16 %v584_v21, %v583_v20  ;;  %1439 = vmatpush3.bf16.msra.mxu1 %v1704_v30 }
 0x11c   : > { %1432 = vmatprep.subr.bf16.mxu1 %v1480_v24 }
 0x11d   : > { %1390 = vmatprep.mubr.bf16.mxu1 %v593_v23 }
 0x11e   : > { %1391 = vmatmul.mubr.bf16.gmra.mrb[12].mxu1 %v594_v22 }
 0x11f   : > { %1440 = vmatpush3.bf16.msra.mxu1 %v1480_v24 }
 0x120   : > { %1433 = vmatprep.subr.bf16.mxu1 %v1481_v25 }
 0x123   : > { %1441 = vmatpush3.bf16.msra.mxu1 %v1481_v25  ;;  %v1755_v25 = vld [vmem:[%s1853_s7] ss:$0 sm:$0xff] }
 0x1d9   : > { %v1380_v27 = vpop.f32.mrb[0].mxu1 }
 0x1da   : > { %v709_v28 = vadd.f32 %v1380_v27, %v1244_v26  ;;  %v700_v29 = vpop.f32.mrb[1].mxu1 }
 0x1db   : > { %v701_v30 = vadd.f32 %v1244_v26, %v700_v29  ;;  %v1381_v31 = vpop.f32.mrb[2].mxu1 }
 0x1dc   : > { %v712_v32 = vadd.f32 %v1381_v31, %v1244_v26  ;;  %v703_v33 = vpop.f32.mrb[3].mxu1  ;;  %v765_v35 = vmax.f32 %v709_v28, 0.0 }
 0x1dd   : > { %v704_v34 = vadd.f32 %v1244_v26, %v703_v33  ;;  %v763_v37 = vmax.f32 %v701_v30, 0.0 }
 0x1de   : > { %v766_v36 = vmax.f32 %v712_v32, 0.0 }
 0x1df   : > { %v764_v38 = vmax.f32 %v704_v34, 0.0 }
 0x1e0   : > { %v780_v39 = vpack.c.bf16 %v766_v36, %v765_v35 }
 0x1e1   : > { %v779_v40 = vpack.c.bf16 %v764_v38, %v763_v37  ;;  %v1384_v41 = vpop.f32.mrb[4].mxu1 }
 0x1e2   : > { %v725_v42 = vadd.f32 %v1384_v41, %v1244_v26  ;;  %v716_v43 = vpop.f32.mrb[5].mxu1 }
 0x1e3   : > { %v717_v44 = vadd.f32 %v1244_v26, %v716_v43  ;;  %v1385_v45 = vpop.f32.mrb[6].mxu1  ;;  %1410 = vmatprep.mubr.bf16.mxu0 %v779_v40 }
 0x1e4   : > { %v728_v46 = vadd.f32 %v1385_v45, %v1244_v26  ;;  %v719_v47 = vpop.f32.mrb[7].mxu1  ;;  %1411 = vmatmul.mubr.bf16.vlgmr.msra.gmra.mrb[16].mxu0 %v780_v39  ;;  %v769_v49 = vmax.f32 %v725_v42, 0.0 }
 0x1e5   : > { %v720_v48 = vadd.f32 %v1244_v26, %v719_v47  ;;  %v767_v51 = vmax.f32 %v717_v44, 0.0 }
 0x1e6   : > { %v770_v50 = vmax.f32 %v728_v46, 0.0 }
 0x1e7   : > { %v768_v52 = vmax.f32 %v720_v48, 0.0 }
 0x1e8   : > { %v782_v53 = vpack.c.bf16 %v770_v50, %v769_v49 }
 0x1e9   : > { %v781_v54 = vpack.c.bf16 %v768_v52, %v767_v51  ;;  %v1388_v55 = vpop.f32.mrb[8].mxu1 }
 0x1ea   : > { %v741_v56 = vadd.f32 %v1388_v55, %v1244_v26  ;;  %v732_v57 = vpop.f32.mrb[9].mxu1 }
 0x1eb   : > { %v733_v58 = vadd.f32 %v1244_v26, %v732_v57  ;;  %v1389_v59 = vpop.f32.mrb[10].mxu1  ;;  %1414 = vmatprep.mubr.bf16.mxu0 %v781_v54 }
 0x1ec   : > { %v744_v60 = vadd.f32 %v1389_v59, %v1244_v26  ;;  %v735_v61 = vpop.f32.mrb[11].mxu1  ;;  %1415 = vmatmul.mubr.bf16.gmra.mrb[20].mxu0 %v782_v53  ;;  %v773_v63 = vmax.f32 %v741_v56, 0.0 }
 0x1ed   : > { %v736_v62 = vadd.f32 %v1244_v26, %v735_v61  ;;  %v771_v1 = vmax.f32 %v733_v58, 0.0 }
 0x1ee   : > { %v774_v0 = vmax.f32 %v744_v60, 0.0 }
 0x1ef   : > { %v772_v2 = vmax.f32 %v736_v62, 0.0 }
 0x1f0   : > { %v784_v3 = vpack.c.bf16 %v774_v0, %v773_v63 }
 0x1f1   : > { %v783_v4 = vpack.c.bf16 %v772_v2, %v771_v1  ;;  %v1392_v5 = vpop.f32.mrb[12].mxu1 }
 0x1f2   : > { %v757_v6 = vadd.f32 %v1392_v5, %v1244_v26  ;;  %v748_v7 = vpop.f32.mrb[13].mxu1 }
 0x1f3   : > { %v749_v8 = vadd.f32 %v1244_v26, %v748_v7  ;;  %v1393_v9 = vpop.f32.mrb[14].mxu1  ;;  %1418 = vmatprep.mubr.bf16.mxu1 %v783_v4 }
 0x1f4   : > { %v760_v10 = vadd.f32 %v1393_v9, %v1244_v26  ;;  %v751_v11 = vpop.f32.mrb[15].mxu1  ;;  %1419 = vmatmul.mubr.bf16.vlgmr.msra.gmra.mrb[16].mxu1 %v784_v3  ;;  %v777_v13 = vmax.f32 %v757_v6, 0.0 }
 0x1f5   : > { %v752_v12 = vadd.f32 %v1244_v26, %v751_v11  ;;  %v775_v15 = vmax.f32 %v749_v8, 0.0 }
 0x1f6   : > { %v778_v14 = vmax.f32 %v760_v10, 0.0 }
 0x1f7   : > { %v776_v16 = vmax.f32 %v752_v12, 0.0 }
 0x1f8   : > { %v786_v17 = vpack.c.bf16 %v778_v14, %v777_v13 }
 0x1f9   : > { %v785_v18 = vpack.c.bf16 %v776_v16, %v775_v15 }
 0x1fb   : > { %1422 = vmatprep.mubr.bf16.mxu1 %v785_v18 }
 0x1fc   : > { %1423 = vmatmul.mubr.bf16.gmra.mrb[20].mxu1 %v786_v17 }
 0x2b7   : > { %v1412_v20 = vpop.f32.mrb[16].mxu0 }
 0x2b8   : > { %v901_v21 = vadd.f32 %v1412_v20, %v1748_v19  ;;  %v892_v22 = vpop.f32.mrb[17].mxu0 }
 0x2b9   : > { %v893_v23 = vadd.f32 %v1748_v19, %v892_v22  ;;  %v1413_v24 = vpop.f32.mrb[18].mxu0  ;;  %v1787_v22 = vld [vmem:[#allocation2] ss:$0 sm:$0xff] }
 0x2ba   : > { %v957_v26 = vmax.f32 %v901_v21, 0.0  ;;  %v904_v27 = vadd.f32 %v1413_v24, %v1748_v19  ;;  %v895_v28 = vpop.f32.mrb[19].mxu0 }
 0x2bb   : > { %v955_v29 = vmax.f32 %v893_v23, 0.0  ;;  %v896_v30 = vadd.f32 %v1748_v19, %v895_v28 }
 0x2bc   : > { %v958_v31 = vmax.f32 %v904_v27, 0.0  ;;  %v981_v32 = vmul.f32 %v1755_v25, %v957_v26 }
 0x2bd   : > { %v956_v33 = vmax.f32 %v896_v30, 0.0  ;;  %v979_v34 = vmul.f32 %v1755_v25, %v955_v29 }
 0x2be   : > { %999 = vadd.xlane.f32.xlu1 %v981_v32  ;;  %v982_v38 = vmul.f32 %v1755_v25, %v958_v31 }
 0x2bf   : > { %v1416_v35 = vpop.f32.mrb[20].mxu0  ;;  %995 = vadd.xlane.f32.xlu0 %v979_v34  ;;  %v980_v41 = vmul.f32 %v1755_v25, %v956_v33 }
 0x2c0   : > { %v917_v36 = vadd.f32 %v1416_v35, %v1748_v19  ;;  %v908_v37 = vpop.f32.mrb[21].mxu0 }
 0x2c1   : > { %v909_v39 = vadd.f32 %v1748_v19, %v908_v37  ;;  %v1417_v40 = vpop.f32.mrb[22].mxu0 }
 0x2c2   : > { %v961_v42 = vmax.f32 %v917_v36, 0.0  ;;  %v920_v43 = vadd.f32 %v1417_v40, %v1748_v19  ;;  %1001 = vadd.xlane.f32.xlu1 %v982_v38  ;;  %v911_v44 = vpop.f32.mrb[23].mxu0 }
 0x2c3   : > { %v912_v45 = vadd.f32 %v1748_v19, %v911_v44  ;;  %997 = vadd.xlane.f32.xlu0 %v980_v41  ;;  %v959_v48 = vmax.f32 %v909_v39, 0.0 }
 0x2c4   : > { %v962_v46 = vmax.f32 %v920_v43, 0.0  ;;  %v985_v47 = vmul.f32 %v1755_v25, %v961_v42 }
 0x2c5   : > { %v960_v49 = vmax.f32 %v912_v45, 0.0  ;;  %v983_v56 = vmul.f32 %v1755_v25, %v959_v48 }
 0x2c6   : > { %v986_v50 = vmul.f32 %v1755_v25, %v962_v46 }
 0x2c7   : > { %v1420_v51 = vpop.f32.mrb[16].mxu1  ;;  %1007 = vadd.xlane.f32.xlu0 %v985_v47  ;;  %v984_v60 = vmul.f32 %v1755_v25, %v960_v49 }
 0x2c8   : > { %v933_v52 = vadd.f32 %v1420_v51, %v1748_v19  ;;  %v924_v53 = vpop.f32.mrb[17].mxu1  ;;  %1009 = vadd.xlane.f32.xlu1 %v986_v50 }
 0x2c9   : > { %v925_v54 = vadd.f32 %v1748_v19, %v924_v53  ;;  %v1421_v55 = vpop.f32.mrb[18].mxu1 }
 0x2ca   : > { %v965_v57 = vmax.f32 %v933_v52, 0.0  ;;  %v936_v58 = vadd.f32 %v1421_v55, %v1748_v19  ;;  %v927_v59 = vpop.f32.mrb[19].mxu1 }
 0x2cb   : > { %v928_v61 = vadd.f32 %v1748_v19, %v927_v59  ;;  %1003 = vadd.xlane.f32.xlu0 %v983_v56  ;;  %v963_v0 = vmax.f32 %v925_v54, 0.0 }
 0x2cc   : > { %v966_v62 = vmax.f32 %v936_v58, 0.0  ;;  %1005 = vadd.xlane.f32.xlu1 %v984_v60  ;;  %v989_v63 = vmul.f32 %v1755_v25, %v965_v57 }
 0x2cd   : > { %v964_v1 = vmax.f32 %v928_v61, 0.0  ;;  %v987_v8 = vmul.f32 %v1755_v25, %v963_v0 }
 0x2ce   : > { %v990_v2 = vmul.f32 %v1755_v25, %v966_v62 }
 0x2cf   : > { %v1424_v3 = vpop.f32.mrb[20].mxu1  ;;  %1015 = vadd.xlane.f32.xlu0 %v989_v63  ;;  %v988_v10 = vmul.f32 %v1755_v25, %v964_v1 }
 0x2d0   : > { %v940_v4 = vpop.f32.mrb[21].mxu1  ;;  %1017 = vadd.xlane.f32.xlu1 %v990_v2  ;;  %v949_v5 = vadd.f32 %v1424_v3, %v1748_v19 }
 0x2d1   : > { %v941_v6 = vadd.f32 %v1748_v19, %v940_v4  ;;  %v1425_v7 = vpop.f32.mrb[22].mxu1 }
 0x2d2   : > { %v943_v9 = vpop.f32.mrb[23].mxu1  ;;  %v952_v12 = vadd.f32 %v1425_v7, %v1748_v19  ;;  %v969_v14 = vmax.f32 %v949_v5, 0.0 }
 0x2d3   : > { %v967_v11 = vmax.f32 %v941_v6, 0.0  ;;  %v944_v13 = vadd.f32 %v1748_v19, %v943_v9  ;;  %1011 = vadd.xlane.f32.xlu0 %v987_v8 }
 0x2d4   : > { %1013 = vadd.xlane.f32.xlu1 %v988_v10  ;;  %v970_v17 = vmax.f32 %v952_v12, 0.0  ;;  %v993_v20 = vmul.f32 %v1755_v25, %v969_v14 }
 0x2d5   : > { %v968_v15 = vmax.f32 %v944_v13, 0.0  ;;  %v991_v16 = vmul.f32 %v1755_v25, %v967_v11 }
 0x2d6   : > { %v994_v21 = vmul.f32 %v1755_v25, %v970_v17 }
 0x2d7   : > { %1019 = vadd.xlane.f32.xlu0 %v991_v16  ;;  %v992_v18 = vmul.f32 %v1755_v25, %v968_v15 }
 0x2d9   : > { %1021 = vadd.xlane.f32.xlu1 %v992_v18 }
 0x2db   : > { %1023 = vadd.xlane.f32.xlu0 %v993_v20 }
 0x2dd   : > { %1025 = vadd.xlane.f32.xlu1 %v994_v21 }
 0x34b   : > { %v1000_v19 = vpop.xlane.xlu1 %999 }
 0x34c   : > { %v1035_v23 = vadd.f32 %v1787_v22, %v1000_v19  ;;  %v996_v24 = vpop.xlane.xlu0 %995 }
 0x34d   : > { %v1033_v26 = vadd.f32 %v1787_v22, %v996_v24 }
 0x34e   : > { %v1266_v27 = vmul.f32 -1.442695, %v1035_v23 }
 0x34f   : > { %v1264_v28 = vmul.f32 -1.442695, %v1033_v26  ;;  %v1002_v29 = vpop.xlane.xlu1 %1001 }
 0x350   : > { %1482 = vpow2.f32 %v1266_v27  ;;  %v1036_v30 = vadd.f32 %v1787_v22, %v1002_v29  ;;  %v998_v31 = vpop.xlane.xlu0 %997 }
 0x351   : > { %1484 = vpow2.f32 %v1264_v28  ;;  %v1034_v32 = vadd.f32 %v1787_v22, %v998_v31 }
 0x352   : > { %v1267_v25 = vmul.f32 -1.442695, %v1036_v30 }
 0x353   : > { %v1265_v33 = vmul.f32 -1.442695, %v1034_v32 }
 0x354   : > { %1486 = vpow2.f32 %v1267_v25  ;;  %v1008_v34 = vpop.xlane.xlu0 %1007 }
 0x355   : > { %1488 = vpow2.f32 %v1265_v33  ;;  %v1039_v35 = vadd.f32 %v1787_v22, %v1008_v34  ;;  %v1010_v36 = vpop.xlane.xlu1 %1009 }
 0x356   : > { %v1040_v37 = vadd.f32 %v1787_v22, %v1010_v36 }
 0x357   : > { %v1270_v38 = vmul.f32 -1.442695, %v1039_v35 }
 0x358   : > { %v1271_v39 = vmul.f32 -1.442695, %v1040_v37  ;;  %v1004_v40 = vpop.xlane.xlu0 %1003 }
 0x359   : > { %1490 = vpow2.f32 %v1270_v38  ;;  %v1037_v41 = vadd.f32 %v1787_v22, %v1004_v40  ;;  %v1006_v42 = vpop.xlane.xlu1 %1005 }
 0x35a   : > { %v1483_v43 = vpop.eup %1482  ;;  %1492 = vpow2.f32 %v1271_v39  ;;  %v1038_v44 = vadd.f32 %v1787_v22, %v1006_v42 }
 0x35b   : > { %v1485_v45 = vpop.eup %1484  ;;  %v1099_v46 = vadd.f32 1.0, %v1483_v43  ;;  %v1268_v47 = vmul.f32 -1.442695, %v1037_v41 }
 0x35c   : > { %v1097_v48 = vadd.f32 1.0, %v1485_v45  ;;  %v1269_v49 = vmul.f32 -1.442695, %v1038_v44  ;;  %v1016_v50 = vpop.xlane.xlu0 %1015 }
 0x35d   : > { %1494 = vrcp.f32 %v1099_v46  ;;  %v1043_v51 = vadd.f32 %v1787_v22, %v1016_v50  ;;  %v1018_v52 = vpop.xlane.xlu1 %1017 }
 0x35e   : > { %v1487_v53 = vpop.eup %1486  ;;  %1496 = vrcp.f32 %v1097_v48  ;;  %v1044_v54 = vadd.f32 %v1787_v22, %v1018_v52 }
 0x35f   : > { %v1489_v55 = vpop.eup %1488  ;;  %v1100_v56 = vadd.f32 1.0, %v1487_v53  ;;  %1498 = vpow2.f32 %v1268_v47  ;;  %v1274_v57 = vmul.f32 -1.442695, %v1043_v51 }
 0x360   : > { %v1098_v58 = vadd.f32 1.0, %v1489_v55  ;;  %1500 = vpow2.f32 %v1269_v49  ;;  %v1275_v59 = vmul.f32 -1.442695, %v1044_v54  ;;  %v1012_v60 = vpop.xlane.xlu0 %1011 }
 0x361   : > { %1502 = vrcp.f32 %v1100_v56  ;;  %v1041_v61 = vadd.f32 %v1787_v22, %v1012_v60  ;;  %v1014_v62 = vpop.xlane.xlu1 %1013 }
 0x362   : > { %1504 = vrcp.f32 %v1098_v58  ;;  %v1042_v63 = vadd.f32 %v1787_v22, %v1014_v62 }
 0x363   : > { %v1491_v0 = vpop.eup %1490  ;;  %1506 = vpow2.f32 %v1274_v57  ;;  %v1272_v1 = vmul.f32 -1.442695, %v1041_v61 }
 0x364   : > { %v1493_v2 = vpop.eup %1492  ;;  %v1103_v3 = vadd.f32 1.0, %v1491_v0  ;;  %1508 = vpow2.f32 %v1275_v59  ;;  %v1273_v4 = vmul.f32 -1.442695, %v1042_v63  ;;  %v1020_v5 = vpop.xlane.xlu0 %1019 }
 0x365   : > { %v1104_v6 = vadd.f32 1.0, %v1493_v2  ;;  %1510 = vpow2.f32 %v1272_v1  ;;  %v1045_v7 = vadd.f32 %v1787_v22, %v1020_v5 }
 0x366   : > { %1512 = vrcp.f32 %v1103_v3  ;;  %v1022_v8 = vpop.xlane.xlu1 %1021 }
 0x367   : > { %v1495_v9 = vpop.eup %1494  ;;  %1514 = vrcp.f32 %v1104_v6  ;;  %v1276_v10 = vmul.f32 -1.442695, %v1045_v7  ;;  %v1046_v11 = vadd.f32 %v1787_v22, %v1022_v8 }
 0x368   : > { %v1497_v12 = vpop.eup %1496  ;;  %1148 = vst.msk [vmem:[%s1805_s16 + $0x10] sm:$0xff] %vm1145_vm0, %v1495_v9  ;;  %1516 = vpow2.f32 %v1273_v4  ;;  %v1024_v13 = vpop.xlane.xlu0 %1023 }
 0x369   : > { %v1499_v14 = vpop.eup %1498  ;;  %1146 = vst.msk [vmem:[%s1805_s16] sm:$0xff] %vm1145_vm0, %v1497_v12  ;;  %1518 = vpow2.f32 %v1276_v10  ;;  %v1277_v15 = vmul.f32 -1.442695, %v1046_v11  ;;  %v1047_v16 = vadd.f32 %v1787_v22, %v1024_v13 }
 0x36a   : > { %v1501_v17 = vpop.eup %1500  ;;  %v1101_v18 = vadd.f32 1.0, %v1499_v14  ;;  %v1026_v20 = vpop.xlane.xlu1 %1025 }
 0x36b   : > { %v1503_v21 = vpop.eup %1502  ;;  %v1102_v19 = vadd.f32 1.0, %v1501_v17  ;;  %1520 = vpow2.f32 %v1277_v15  ;;  %v1278_v23 = vmul.f32 -1.442695, %v1047_v16  ;;  %v1048_v24 = vadd.f32 %v1787_v22, %v1026_v20 }
 0x36c   : > { %v1505_v26 = vpop.eup %1504  ;;  %1149 = vst.msk [vmem:[%s1805_s16 + $0x18] sm:$0xff] %vm1145_vm0, %v1503_v21  ;;  %1522 = vrcp.f32 %v1101_v18 }
 0x36d   : > { %v1507_v27 = vpop.eup %1506  ;;  %1147 = vst.msk [vmem:[%s1805_s16 + $0x8] sm:$0xff] %vm1145_vm0, %v1505_v26  ;;  %1524 = vrcp.f32 %v1102_v19  ;;  %v1279_v28 = vmul.f32 -1.442695, %v1048_v24 }
 0x36e   : > { %v1509_v29 = vpop.eup %1508  ;;  %v1107_v30 = vadd.f32 1.0, %v1507_v27  ;;  %1526 = vpow2.f32 %v1278_v23 }
 0x36f   : > { %v1511_v31 = vpop.eup %1510  ;;  %v1108_v32 = vadd.f32 1.0, %v1509_v29  ;;  %1528 = vpow2.f32 %v1279_v28 }
 0x370   : > { %v1513_v25 = vpop.eup %1512  ;;  %1530 = vrcp.f32 %v1107_v30  ;;  %v1105_v22 = vadd.f32 1.0, %v1511_v31 }
 0x371   : > { %v1515_v33 = vpop.eup %1514  ;;  %1152 = vst.msk [vmem:[%s1805_s16 + $0x30] sm:$0xff] %vm1145_vm0, %v1513_v25  ;;  %1532 = vrcp.f32 %v1108_v32 }
 0x372   : > { %v1517_v34 = vpop.eup %1516  ;;  %1153 = vst.msk [vmem:[%s1805_s16 + $0x38] sm:$0xff] %vm1145_vm0, %v1515_v33  ;;  %1534 = vrcp.f32 %v1105_v22 }
 0x373   : > { %v1519_v35 = vpop.eup %1518  ;;  %v1106_v36 = vadd.f32 1.0, %v1517_v34 }
 0x374   : > { %v1109_v37 = vadd.f32 1.0, %v1519_v35 }
 0x375   : > { %v1521_v38 = vpop.eup %1520  ;;  %1536 = vrcp.f32 %v1106_v36 }
 0x376   : > { %v1523_v39 = vpop.eup %1522  ;;  %1538 = vrcp.f32 %v1109_v37  ;;  %v1110_v40 = vadd.f32 1.0, %v1521_v38 }
 0x377   : > { %v1525_v41 = vpop.eup %1524  ;;  %1150 = vst.msk [vmem:[%s1805_s16 + $0x20] sm:$0xff] %vm1145_vm0, %v1523_v39 }
 0x378   : > { %v1527_v42 = vpop.eup %1526  ;;  %1151 = vst.msk [vmem:[%s1805_s16 + $0x28] sm:$0xff] %vm1145_vm0, %v1525_v41  ;;  %1540 = vrcp.f32 %v1110_v40 }
 0x379   : > { %v1529_v43 = vpop.eup %1528  ;;  %v1111_v44 = vadd.f32 1.0, %v1527_v42 }
 0x37a   : > { %v1531_v45 = vpop.eup %1530  ;;  %v1112_v46 = vadd.f32 1.0, %v1529_v43 }
 0x37b   : > { %v1533_v47 = vpop.eup %1532  ;;  %1156 = vst.msk [vmem:[%s1805_s16 + $0x50] sm:$0xff] %vm1145_vm0, %v1531_v45  ;;  %1542 = vrcp.f32 %v1111_v44 }
 0x37c   : > { %v1535_v48 = vpop.eup %1534  ;;  %1157 = vst.msk [vmem:[%s1805_s16 + $0x58] sm:$0xff] %vm1145_vm0, %v1533_v47  ;;  %1544 = vrcp.f32 %v1112_v46 }
 0x37d   : > { %1154 = vst.msk [vmem:[%s1805_s16 + $0x40] sm:$0xff] %vm1145_vm0, %v1535_v48 }
 0x37f   : > { %v1537_v49 = vpop.eup %1536 }
 0x380   : > { %v1539_v50 = vpop.eup %1538  ;;  %1155 = vst.msk [vmem:[%s1805_s16 + $0x48] sm:$0xff] %vm1145_vm0, %v1537_v49 }
 0x381   : > { %1158 = vst.msk [vmem:[%s1805_s16 + $0x60] sm:$0xff] %vm1145_vm0, %v1539_v50 }
 0x382   : > { %v1541_v51 = vpop.eup %1540 }
 0x383   : > { %1159 = vst.msk [vmem:[%s1805_s16 + $0x68] sm:$0xff] %vm1145_vm0, %v1541_v51 }
 0x385   : > { %v1543_v52 = vpop.eup %1542 }
 0x386   : > { %v1545_v53 = vpop.eup %1544  ;;  %1160 = vst.msk [vmem:[%s1805_s16 + $0x70] sm:$0xff] %vm1145_vm0, %v1543_v52 }
 0x387   : > { %1161 = vst.msk [vmem:[%s1805_s16 + $0x78] sm:$0xff] %vm1145_vm0, %v1545_v53 }
 0x388 PF: > { %s21_s11 = sadd.s32 1, %s1552_s11  }
 0x389   : > { %p18_p4 = scmp.ge.s32.totalorder %s21_s11, 4  }
 0x38b   :  { %20 = sbr.rel (!%p18_p4) target bundleno = 3 (0x3), region = 86 }

</bundles_post_ra>
